<compile_context>
chip_gen: v5e
topology: v5e:2x2
jax: 0.10.0
libtpu: 0.0.40
codegen_flags: <defaults>
</compile_context>

<pallas_src>
import functools

import jax
import jax.numpy as jnp
from jax.experimental import pallas as pl
from jax.experimental.pallas import tpu as pltpu


def _round_up(n, m):
    return (n + m - 1) // m * m


def _vmem_limit_bytes():
    # ~75% of physical VMEM, capped at 100 MiB (v5e/v6e: 128 MiB -> 96 MiB;
    # v7x: 64 MiB -> 48 MiB).  Toy sizes need <2 MiB; this matters when H/TB scale.
    try:
        phys = pltpu.get_tpu_info().vmem_capacity_bytes
        return int(min(phys * 3 // 4, 100 * 1024 * 1024))
    except Exception:
        return 32 * 1024 * 1024


# -----------------------------------------------------------------------------------
# Kernel
# -----------------------------------------------------------------------------------
def _joint_coupling_kernel(
    x_ref, mask_ref,
    w1_ref, b1_ref, w2_ref, b2_ref, w3_ref, b3_ref,
    y_ref, ld_ref,
    *, d, dp,
):
    x = x_ref[...]                         # (TB, D)  f32
    mask = mask_ref[...]                   # (1, D)   broadcasts over batch
    one_minus_mask = 1.0 - mask            # hoisted once
    x_m = x * mask

    wdt = w1_ref.dtype                     # f32 or bf16 (MXU input dtype)

    # Fused layer 1: [s_fc1 | t_fc1]  -> (TB, H2p).  K = D (true width).
    h = jnp.dot(x_m.astype(wdt), w1_ref[...],
                preferred_element_type=jnp.float32) + b1_ref[...]
    h = jnp.maximum(h, 0.0)
    # Fused layer 2: block-diag(s_fc2, t_fc2) -> (TB, H2p)
    h = jnp.dot(h.astype(wdt), w2_ref[...],
                preferred_element_type=jnp.float32) + b2_ref[...]
    h = jnp.maximum(h, 0.0)
    # Fused layer 3: block-diag(s_fc3, t_fc3) -> (TB, 2*Dp)
    #   cols [0 : Dp)      : s logits (cols [d:Dp) have zero weights/bias => exactly 0)
    #   cols [Dp : 2*Dp)   : t output (cols [Dp+d:) exactly 0, never used)
    o3 = jnp.dot(h.astype(wdt), w3_ref[...],
                 preferred_element_type=jnp.float32) + b3_ref[...]

    s_full = jnp.tanh(o3[:, :dp])          # (TB, Dp); tanh(0)=0 in padded lanes
    s_out = s_full[:, :d]                  # offset-0 narrowing, no lane shuffle
    t_out = o3[:, dp:dp + d]               # starts on a 128-lane tile boundary

    # Affine coupling (all f32 elementwise / EUP math).
    y_ref[...] = x_m + one_minus_mask * (x * jnp.exp(s_out) + t_out)
    # log-det-Jacobian: padded lanes of s_full are exactly 0, so the sum is exact.
    ld_ref[...] = jnp.sum(s_full, axis=1, keepdims=True)


# -----------------------------------------------------------------------------------
# One-time packing (call once at init; reuse the returned dict every forward)
# -----------------------------------------------------------------------------------
def pack_params(params, mask, *, weight_dtype=jnp.float32):
    """Pack the s/t MLPs into fused weights.  Weights are (in, out) layout.
    weight_dtype controls only the MXU input dtype (biases stay f32)."""
    D, H = params["s_w1"].shape
    Dp = _round_up(D, 128)                 # lane-padded width for the internal s|t split
    H2 = 2 * H
    H2p = _round_up(H2, 128)
    f32 = jnp.float32
    wd = weight_dtype

    w1 = (jnp.zeros((D, H2p), wd)
          .at[:, :H].set(params["s_w1"].astype(wd))
          .at[:, H:H2].set(params["t_w1"].astype(wd)))
    b1 = (jnp.zeros((1, H2p), f32)
          .at[0, :H].set(params["s_b1"]).at[0, H:H2].set(params["t_b1"]))
    w2 = (jnp.zeros((H2p, H2p), wd)
          .at[:H, :H].set(params["s_w2"].astype(wd))
          .at[H:H2, H:H2].set(params["t_w2"].astype(wd)))
    b2 = (jnp.zeros((1, H2p), f32)
          .at[0, :H].set(params["s_b2"]).at[0, H:H2].set(params["t_b2"]))
    w3 = (jnp.zeros((H2p, 2 * Dp), wd)
          .at[:H, :D].set(params["s_w3"].astype(wd))
          .at[H:H2, Dp:Dp + D].set(params["t_w3"].astype(wd)))
    b3 = (jnp.zeros((1, 2 * Dp), f32)
          .at[0, :D].set(params["s_b3"]).at[0, Dp:Dp + D].set(params["t_b3"]))

    return {
        "w1": w1, "b1": b1, "w2": w2, "b2": b2, "w3": w3, "b3": b3,
        "mask": mask.reshape(1, D).astype(f32),
        "d": D, "dp": Dp, "h2p": H2p,
    }


# -----------------------------------------------------------------------------------
# Forward wrapper
# -----------------------------------------------------------------------------------
def joint_coupling_forward(x, packed, *, batch_tile=1024):
    """x: (B, D) f32; packed: result of pack_params().  Returns (y (B,D), log_det (B,))."""
    B, D = x.shape
    assert D == packed["d"], "feature dim mismatch with packed params"
    Dp, H2p = packed["dp"], packed["h2p"]
    f32 = jnp.float32

    # Batch tiling: minimal sublane padding, near-even tiles, >=2 tiles when splittable
    # so the "parallel" axis can shard across v7x's two TensorCores.
    B8 = _round_up(B, 8)
    n_tiles = max(pl.cdiv(B8, batch_tile), 2 if B8 >= 16 else 1)
    TB = _round_up(pl.cdiv(B8, n_tiles), 8)
    n_tiles = pl.cdiv(B8, TB)
    B_pad = TB * n_tiles

    # Only copy-pad x when strictly necessary (padded rows are zeros -> sliced off).
    x_in = x if B_pad == B else jnp.zeros((B_pad, D), f32).at[:B].set(x)

    def resident(shape):   # constant index_map -> loaded once, stays resident in VMEM
        return pl.BlockSpec(shape, lambda i: (0,) * len(shape))

    kernel = functools.partial(_joint_coupling_kernel, d=D, dp=Dp)

    y_pad, ld = pl.pallas_call(
        kernel,
        grid=(n_tiles,),
        in_specs=[
            pl.BlockSpec((TB, D), lambda i: (i, 0)),     # x batch tiles (pipelined)
            resident((1, D)),                            # mask
            resident((D, H2p)), resident((1, H2p)),      # fused layer 1
            resident((H2p, H2p)), resident((1, H2p)),    # fused layer 2
            resident((H2p, 2 * Dp)), resident((1, 2 * Dp)),  # fused layer 3
        ],
        out_specs=(
            pl.BlockSpec((TB, D), lambda i: (i, 0)),     # y at true width D
            pl.BlockSpec((TB, 1), lambda i: (i, 0)),     # log-det (1 col)
        ),
        out_shape=(
            jax.ShapeDtypeStruct((B_pad, D), f32),
            jax.ShapeDtypeStruct((B_pad, 1), f32),
        ),
        compiler_params=pltpu.CompilerParams(
            dimension_semantics=("parallel",),           # shard batch across TCs
            vmem_limit_bytes=_vmem_limit_bytes(),
        ),
    )(x_in, packed["mask"], packed["w1"], packed["b1"],
      packed["w2"], packed["b2"], packed["w3"], packed["b3"])

    if B_pad == B:
        return y_pad, ld[:, 0]
    return y_pad[:B], ld[:B, 0]


# -----------------------------------------------------------------------------------
# Init + pure-JAX reference
# -----------------------------------------------------------------------------------
def init_params(key, input_dim, output_dim, hid_dim):
    """Deterministic init mimicking nn.Linear (uniform +-1/sqrt(fan_in)).
    Weights stored as (in, out) — transpose of PyTorch's (out, in)."""
    ks = jax.random.split(key, 12)

    def lin(kw, kb, fan_in, fan_out):
        bound = 1.0 / jnp.sqrt(fan_in)
        w = jax.random.uniform(kw, (fan_in, fan_out), jnp.float32, -bound, bound)
        b = jax.random.uniform(kb, (fan_out,), jnp.float32, -bound, bound)
        return w, b

    p = {}
    p["s_w1"], p["s_b1"] = lin(ks[0], ks[1], input_dim, hid_dim)
    p["s_w2"], p["s_b2"] = lin(ks[2], ks[3], hid_dim, hid_dim)
    p["s_w3"], p["s_b3"] = lin(ks[4], ks[5], hid_dim, output_dim)
    p["t_w1"], p["t_b1"] = lin(ks[6], ks[7], input_dim, hid_dim)
    p["t_w2"], p["t_b2"] = lin(ks[8], ks[9], hid_dim, hid_dim)
    p["t_w3"], p["t_b3"] = lin(ks[10], ks[11], hid_dim, output_dim)
    return p


def reference_forward(x, mask, params, mxu_dtype=jnp.float32):
    """Plain-JAX reference matching the PyTorch forward.  mxu_dtype lets us build a
    matched bf16-matmul reference (f32 accumulation, f32 elementwise)."""
    relu = lambda v: jnp.maximum(v, 0.0)

    def dot(a, w):
        return jnp.dot(a.astype(mxu_dtype), w.astype(mxu_dtype),
                       preferred_element_type=jnp.float32)

    x_m = x * mask
    h = relu(dot(x_m, params["s_w1"]) + params["s_b1"])
    h = relu(dot(h, params["s_w2"]) + params["s_b2"])
    s_out = jnp.tanh(dot(h, params["s_w3"]) + params["s_b3"])
    g = relu(dot(x_m, params["t_w1"]) + params["t_b1"])
    g = relu(dot(g, params["t_w2"]) + params["t_b2"])
    t_out = dot(g, params["t_w3"]) + params["t_b3"]
    y = x_m + (1.0 - mask) * (x * jnp.exp(s_out) + t_out)
    # NOTE: matches the PyTorch module exactly: log-det sums s over ALL dims
    # (including masked ones), per `s_out.sum(dim=1)` in the spec.
    return y, s_out.sum(axis=1)


# TODO(synk): the module's `backward` (inverse) pass is not implemented; only the
# forward pass was requested.

if __name__ == "__main__":
    D, H = 16, 32  # input_dim = output_dim, hid_dim

    key = jax.random.PRNGKey(0)
    k_p, k_x1, k_x2 = jax.random.split(key, 3)
    mask = (jnp.arange(D) % 2).astype(jnp.float32)   # alternating RealNVP-style mask
    params = init_params(k_p, D, D, H)

    # Pack ONCE at init (f32 MXU inputs by default; bf16 variant also packed once).
    packed_f32 = pack_params(params, mask)
    packed_bf16 = pack_params(params, mask, weight_dtype=jnp.bfloat16)

    # --- small batch: single tile, no padding copies at all ------------------------
    x_small = jax.random.normal(k_x1, (8, D), jnp.float32)
    y, log_det = joint_coupling_forward(x_small, packed_f32)
    jax.block_until_ready((y, log_det))
    y_ref, ld_ref = reference_forward(x_small, mask, params)
    assert y.shape == (8, D) and log_det.shape == (8,)
    assert jnp.allclose(y, y_ref, atol=1e-5, rtol=1e-5)
    assert jnp.allclose(log_det, ld_ref, atol=1e-5, rtol=1e-5)

    # --- larger, non-multiple batch: exercises tail padding + >=2-tile parallel grid -
    x_big = jax.random.normal(k_x2, (260, D), jnp.float32)
    yb, ldb = joint_coupling_forward(x_big, packed_f32)
    jax.block_until_ready((yb, ldb))
    yb_ref, ldb_ref = reference_forward(x_big, mask, params)
    assert yb.shape == (260, D) and ldb.shape == (260,)
    assert jnp.allclose(yb, yb_ref, atol=1e-5, rtol=1e-5)
    assert jnp.allclose(ldb, ldb_ref, atol=1e-5, rtol=1e-5)

    # --- bf16 MXU inputs (f32 accumulation/elementwise) vs matched bf16 reference ----
    yh, ldh = joint_coupling_forward(x_big, packed_bf16)
    jax.block_until_ready((yh, ldh))
    yh_ref, ldh_ref = reference_forward(x_big, mask, params, mxu_dtype=jnp.bfloat16)
    assert jnp.allclose(yh, yh_ref, atol=1e-3, rtol=1e-3)
    assert jnp.allclose(ldh, ldh_ref, atol=1e-3, rtol=1e-3)

    print("KERNEL_OK")
</pallas_src>

<mosaic_0001>
module attributes {stable_mosaic.version = 11 : i64} {
  func.func @_joint_coupling_kernel(%arg0: i32, %arg1: memref<8x16xf32, #tpu.memory_space<vmem>>, %arg2: memref<1x16xf32, #tpu.memory_space<vmem>>, %arg3: memref<16x128xf32, #tpu.memory_space<vmem>>, %arg4: memref<1x128xf32, #tpu.memory_space<vmem>>, %arg5: memref<128x128xf32, #tpu.memory_space<vmem>>, %arg6: memref<1x128xf32, #tpu.memory_space<vmem>>, %arg7: memref<128x256xf32, #tpu.memory_space<vmem>>, %arg8: memref<1x256xf32, #tpu.memory_space<vmem>>, %arg9: memref<8x16xf32, #tpu.memory_space<vmem>>, %arg10: memref<8x1xf32, #tpu.memory_space<vmem>>) attributes {dimension_semantics = [#tpu.dimension_semantics<parallel>], iteration_bounds = array<i64: 1>, scalar_prefetch = 0 : i64, scratch_operands = 0 : i64, tpu.core_type = #tpu.core_type<tc>, window_params = [{transform_indices = @transform_0, window_bounds = array<i64: 8, 16>}, {pipeline_mode = #tpu.pipeline_mode<synchronous>, transform_indices = @transform_1, window_bounds = array<i64: 1, 16>}, {pipeline_mode = #tpu.pipeline_mode<synchronous>, transform_indices = @transform_2, window_bounds = array<i64: 16, 128>}, {pipeline_mode = #tpu.pipeline_mode<synchronous>, transform_indices = @transform_3, window_bounds = array<i64: 1, 128>}, {pipeline_mode = #tpu.pipeline_mode<synchronous>, transform_indices = @transform_4, window_bounds = array<i64: 128, 128>}, {pipeline_mode = #tpu.pipeline_mode<synchronous>, transform_indices = @transform_5, window_bounds = array<i64: 1, 128>}, {pipeline_mode = #tpu.pipeline_mode<synchronous>, transform_indices = @transform_6, window_bounds = array<i64: 128, 256>}, {pipeline_mode = #tpu.pipeline_mode<synchronous>, transform_indices = @transform_7, window_bounds = array<i64: 1, 256>}, {transform_indices = @transform_8, window_bounds = array<i64: 8, 16>}, {transform_indices = @transform_9, window_bounds = array<i64: 8, 1>}]} {
    %c0 = arith.constant 0 : index
    %c0_0 = arith.constant 0 : index
    %0 = vector.load %arg1[%c0, %c0_0] : memref<8x16xf32, #tpu.memory_space<vmem>>, vector<8x16xf32>
    %c0_1 = arith.constant 0 : index
    %c0_2 = arith.constant 0 : index
    %1 = vector.load %arg2[%c0_1, %c0_2] : memref<1x16xf32, #tpu.memory_space<vmem>>, vector<1x16xf32>
    %cst = arith.constant 1.000000e+00 : f32
    %2 = vector.broadcast %cst : f32 to vector<1x16xf32>
    %3 = arith.subf %2, %1 : vector<1x16xf32>
    %4 = vector.broadcast %1 : vector<1x16xf32> to vector<8x16xf32>
    %5 = arith.mulf %0, %4 : vector<8x16xf32>
    %c0_3 = arith.constant 0 : index
    %c0_4 = arith.constant 0 : index
    %6 = vector.load %arg3[%c0_3, %c0_4] : memref<16x128xf32, #tpu.memory_space<vmem>>, vector<16x128xf32>
    %cst_5 = arith.constant dense<0.000000e+00> : vector<8x128xf32>
    %7 = tpu.matmul %5, %6, %cst_5 {dimension_numbers = #tpu.dot_dimension_numbers<[1], [0], [0], [1], [0, 0, 1, 1], [], []>} : vector<8x16xf32>, vector<16x128xf32>, vector<8x128xf32> -> vector<8x128xf32>
    %c0_6 = arith.constant 0 : index
    %c0_7 = arith.constant 0 : index
    %8 = vector.load %arg4[%c0_6, %c0_7] : memref<1x128xf32, #tpu.memory_space<vmem>>, vector<1x128xf32>
    %9 = vector.broadcast %8 : vector<1x128xf32> to vector<8x128xf32>
    %10 = arith.addf %7, %9 : vector<8x128xf32>
    %cst_8 = arith.constant 0.000000e+00 : f32
    %11 = vector.broadcast %cst_8 : f32 to vector<8x128xf32>
    %12 = arith.maximumf %10, %11 : vector<8x128xf32>
    %c0_9 = arith.constant 0 : index
    %c0_10 = arith.constant 0 : index
    %13 = vector.load %arg5[%c0_9, %c0_10] : memref<128x128xf32, #tpu.memory_space<vmem>>, vector<128x128xf32>
    %cst_11 = arith.constant dense<0.000000e+00> : vector<8x128xf32>
    %14 = tpu.matmul %12, %13, %cst_11 {dimension_numbers = #tpu.dot_dimension_numbers<[1], [0], [0], [1], [0, 0, 1, 1], [], []>} : vector<8x128xf32>, vector<128x128xf32>, vector<8x128xf32> -> vector<8x128xf32>
    %c0_12 = arith.constant 0 : index
    %c0_13 = arith.constant 0 : index
    %15 = vector.load %arg6[%c0_12, %c0_13] : memref<1x128xf32, #tpu.memory_space<vmem>>, vector<1x128xf32>
    %16 = vector.broadcast %15 : vector<1x128xf32> to vector<8x128xf32>
    %17 = arith.addf %14, %16 : vector<8x128xf32>
    %cst_14 = arith.constant 0.000000e+00 : f32
    %18 = vector.broadcast %cst_14 : f32 to vector<8x128xf32>
    %19 = arith.maximumf %17, %18 : vector<8x128xf32>
    %c0_15 = arith.constant 0 : index
    %c0_16 = arith.constant 0 : index
    %20 = vector.load %arg7[%c0_15, %c0_16] : memref<128x256xf32, #tpu.memory_space<vmem>>, vector<128x256xf32>
    %cst_17 = arith.constant dense<0.000000e+00> : vector<8x256xf32>
    %21 = tpu.matmul %19, %20, %cst_17 {dimension_numbers = #tpu.dot_dimension_numbers<[1], [0], [0], [1], [0, 0, 1, 1], [], []>} : vector<8x128xf32>, vector<128x256xf32>, vector<8x256xf32> -> vector<8x256xf32>
    %c0_18 = arith.constant 0 : index
    %c0_19 = arith.constant 0 : index
    %22 = vector.load %arg8[%c0_18, %c0_19] : memref<1x256xf32, #tpu.memory_space<vmem>>, vector<1x256xf32>
    %23 = vector.broadcast %22 : vector<1x256xf32> to vector<8x256xf32>
    %24 = arith.addf %21, %23 : vector<8x256xf32>
    %25 = vector.extract_strided_slice %24 {offsets = [0, 0], sizes = [8, 128], strides = [1, 1]} : vector<8x256xf32> to vector<8x128xf32>
    %26 = math.tanh %25 : vector<8x128xf32>
    %27 = vector.extract_strided_slice %26 {offsets = [0, 0], sizes = [8, 16], strides = [1, 1]} : vector<8x128xf32> to vector<8x16xf32>
    %28 = vector.extract_strided_slice %24 {offsets = [0, 128], sizes = [8, 16], strides = [1, 1]} : vector<8x256xf32> to vector<8x16xf32>
    %29 = math.exp %27 : vector<8x16xf32>
    %30 = arith.mulf %0, %29 : vector<8x16xf32>
    %31 = arith.addf %30, %28 : vector<8x16xf32>
    %32 = vector.broadcast %3 : vector<1x16xf32> to vector<8x16xf32>
    %33 = arith.mulf %32, %31 : vector<8x16xf32>
    %34 = arith.addf %5, %33 : vector<8x16xf32>
    %c0_20 = arith.constant 0 : index
    %c0_21 = arith.constant 0 : index
    %35 = vector.load %arg9[%c0_20, %c0_21] : memref<8x16xf32, #tpu.memory_space<vmem>>, vector<8x16xf32>
    tpu.vector_store %arg9[%c0_20, %c0_21], %34 {strides = array<i32>} : memref<8x16xf32, #tpu.memory_space<vmem>>, vector<8x16xf32>,
    %cst_22 = arith.constant dense<0.000000e+00> : vector<8xf32>
    %36 = vector.multi_reduction <add>, %26, %cst_22 [1] : vector<8x128xf32> to vector<8xf32>
    %37 = vector.shape_cast %36 : vector<8xf32> to vector<8x1xf32>
    %c0_23 = arith.constant 0 : index
    %c0_24 = arith.constant 0 : index
    %38 = vector.load %arg10[%c0_23, %c0_24] : memref<8x1xf32, #tpu.memory_space<vmem>>, vector<8x1xf32>
    tpu.vector_store %arg10[%c0_23, %c0_24], %37 {strides = array<i32>} : memref<8x1xf32, #tpu.memory_space<vmem>>, vector<8x1xf32>,
    return
  }
  func.func @transform_0(%arg0: i32) -> (i32, i32) {
    %c0_i32 = arith.constant 0 : i32
    %c0_i32_0 = arith.constant 0 : i32
    return %arg0, %c0_i32 : i32, i32
  }
  func.func @transform_1(%arg0: i32) -> (i32, i32) {
    %c0_i32 = arith.constant 0 : i32
    %c0_i32_0 = arith.constant 0 : i32
    %c0_i32_1 = arith.constant 0 : i32
    return %c0_i32, %c0_i32_0 : i32, i32
  }
  func.func @transform_2(%arg0: i32) -> (i32, i32) {
    %c0_i32 = arith.constant 0 : i32
    %c0_i32_0 = arith.constant 0 : i32
    %c0_i32_1 = arith.constant 0 : i32
    return %c0_i32, %c0_i32_0 : i32, i32
  }
  func.func @transform_3(%arg0: i32) -> (i32, i32) {
    %c0_i32 = arith.constant 0 : i32
    %c0_i32_0 = arith.constant 0 : i32
    %c0_i32_1 = arith.constant 0 : i32
    return %c0_i32, %c0_i32_0 : i32, i32
  }
  func.func @transform_4(%arg0: i32) -> (i32, i32) {
    %c0_i32 = arith.constant 0 : i32
    %c0_i32_0 = arith.constant 0 : i32
    %c0_i32_1 = arith.constant 0 : i32
    return %c0_i32, %c0_i32_0 : i32, i32
  }
  func.func @transform_5(%arg0: i32) -> (i32, i32) {
    %c0_i32 = arith.constant 0 : i32
    %c0_i32_0 = arith.constant 0 : i32
    %c0_i32_1 = arith.constant 0 : i32
    return %c0_i32, %c0_i32_0 : i32, i32
  }
  func.func @transform_6(%arg0: i32) -> (i32, i32) {
    %c0_i32 = arith.constant 0 : i32
    %c0_i32_0 = arith.constant 0 : i32
    %c0_i32_1 = arith.constant 0 : i32
    return %c0_i32, %c0_i32_0 : i32, i32
  }
  func.func @transform_7(%arg0: i32) -> (i32, i32) {
    %c0_i32 = arith.constant 0 : i32
    %c0_i32_0 = arith.constant 0 : i32
    %c0_i32_1 = arith.constant 0 : i32
    return %c0_i32, %c0_i32_0 : i32, i32
  }
  func.func @transform_8(%arg0: i32) -> (i32, i32) {
    %c0_i32 = arith.constant 0 : i32
    %c0_i32_0 = arith.constant 0 : i32
    return %arg0, %c0_i32 : i32, i32
  }
  func.func @transform_9(%arg0: i32) -> (i32, i32) {
    %c0_i32 = arith.constant 0 : i32
    %c0_i32_0 = arith.constant 0 : i32
    return %arg0, %c0_i32 : i32, i32
  }
}

</mosaic_0001>

<bundles_post_ra>
// kernel: tpu_custom_call.1
= control target key start
LH: loop header
LB: loop body
LE: loop exit
PB: predicated region body
PF: predicated region fallthrough
CT: control target
= control target key end

     0   :  { %15 = vsyncpa [#allocation3], 0  ;;  %s571_s0 = inlined_call_operand.hbm [shape: f32[8,16], index: 0, kind: input, shape index: {}]   ;;  %s572_s1 = inlined_call_operand.hbm [shape: f32[1,16], index: 1, kind: input, shape index: {}]   ;;  %s573_s2 = inlined_call_operand.hbm [shape: f32[16,128], index: 2, kind: input, shape index: {}]   ;;  %s574_s3 = inlined_call_operand.vmem [shape: f32[1,128], index: 3, kind: input, shape index: {}]   ;;  %s575_s4 = inlined_call_operand.hbm [shape: f32[128,128], index: 4, kind: input, shape index: {}]   ;;  %s576_s5 = inlined_call_operand.vmem [shape: f32[1,128], index: 5, kind: input, shape index: {}]   ;;  %s577_s6 = inlined_call_operand.hbm [shape: f32[128,256], index: 6, kind: input, shape index: {}]   ;;  %s578_s7 = inlined_call_operand.vmem [shape: f32[1,256], index: 7, kind: input, shape index: {}]   ;;  %s579_s8 = inlined_call_operand.hbm [shape: f32[8,16], index: 8, kind: output, shape index: {0}]   ;;  %s580_s9 = inlined_call_operand.vmem [shape: f32[8,1], index: 9, kind: output, shape index: {1}]  }
   0x1   :  { %16 = vsyncpa [#allocation6], 0 }
   0x2   :  { %17 = vsyncpa [#allocation9], 0  ;;  %s35_s11 = sshll.u32 %s572_s1, 4  ;;  %s36_s11 = int_to_ptr.hbm [resolvable:$true] %s35_s11 }
   0x3   :  { %18 = vsyncpa [#allocation4], 0  ;;  %s471_s12 = smov [#allocation5]   ;;  %s60_s16 = sshll.u32 %s575_s4, 4  ;;  %s61_s16 = int_to_ptr.hbm [resolvable:$true] %s60_s16 }
   0x4   :  { %s37_s13 = sshll.u32 %s471_s12, 4  ;;  %s472_s17 = smov [#allocation8]   ;;  %s38_s13 = int_to_ptr.vmem [resolvable:$true] %s37_s13 }
   0x5   :  { %40 = dma.hbm_to_vmem [thread:$0]  %s36_s11, 16, %s38_s13, [#allocation6]  }
   0x6   :  { %s62_s18 = sshll.u32 %s472_s17, 4  ;;  %s24_s21 = sshll.u32 %s571_s0, 4  ;;  %s63_s18 = int_to_ptr.vmem [resolvable:$true] %s62_s18  ;;  %s25_s21 = int_to_ptr.hbm [resolvable:$true] %s24_s21 }
   0x7   :  { %s473_s1 = smov 128   ;;  %s474_s22 = smov 8  }
   0x8   :  { %68 = dma.hbm_to_vmem [thread:$0]  %s61_s16, 2048, %s63_s18, [#allocation9], %s473_s1, %s473_s1, %s474_s22  }
   0x9   :  { %s45_s25 = sshll.u32 %s573_s2, 4  ;;  %s475_s26 = smov [#allocation2]   ;;  %s46_s25 = int_to_ptr.hbm [resolvable:$true] %s45_s25 }
   0xa   :  { %s26_s27 = sshll.u32 %s475_s26, 4  ;;  %s476_s4 = smov [#allocation7]   ;;  %s27_s27 = int_to_ptr.vmem [resolvable:$true] %s26_s27 }
   0xb   :  { %29 = dma.hbm_to_vmem [thread:$0]  %s25_s21, 128, %s27_s27, [#allocation3]  }
   0xc   :  { %s47_s28 = sshll.u32 %s476_s4, 4  ;;  %s75_s0 = sshll.u32 %s577_s6, 4  ;;  %s48_s28 = int_to_ptr.vmem [resolvable:$true] %s47_s28  ;;  %s76_s0 = int_to_ptr.hbm [resolvable:$true] %s75_s0 }
   0xd   :  { %53 = dma.hbm_to_vmem [thread:$0]  %s46_s25, 256, %s48_s28, [#allocation6], %s473_s1, %s473_s1, %s474_s22  }
   0xe   :  { %s477_s10 = smov [#allocation10]   ;;  %s478_s12 = smov 256  }
   0xf   :  { %s77_s11 = sshll.u32 %s477_s10, 4  ;;  %s479_s13 = smov 16   ;;  %s78_s11 = int_to_ptr.vmem [resolvable:$true] %s77_s11 }
  0x10   :  { %83 = dma.hbm_to_vmem [thread:$0]  %s76_s0, 4096, %s78_s11, [#allocation9], %s478_s12, %s478_s12, %s479_s13  }
  0x11   :  { %463 = dma.done.wait [#allocation3], 128  }
  0x12   :  { %464 = vsyncadd [#allocation3], 4294967168 }
  0x13   :  { %465 = dma.done.wait [#allocation6], 272  }
  0x14   :  { %466 = vsyncadd [#allocation6], 4294967024 }
  0x15   :  { %467 = dma.done.wait [#allocation9], 6144  }
  0x16   :  { %468 = vsyncadd [#allocation9], 4294961152  ;;  %v114_v0 = vld [vmem:[#allocation7 + $0x8] sm:$0xff]  ;;  %v113_v1 = vld [vmem:[#allocation7] sm:$0xff]  ;;  %vm119_vm0 = vcmask 130048   ;;  %s285_s19 = sshll.u32 %s579_s8, 4  ;;  %s286_s19 = int_to_ptr.hbm [resolvable:$true] %s285_s19 }
  0x17   :  { %v546_v2 = vld [vmem:[#allocation2] sm:$0xff]  ;;  %137 = vmatpush.msra.mxu0 %v114_v0  ;;  %v312_v3 = vld [vmem:[#allocation5] ss:$0 sm:$0xff]  ;;  %v159_v4 = vld [vmem:[#allocation8 + $0x78] sm:$0xff]  ;;  %vm276_vm1 = vcmask 7168  }
  0x18   :  { %164 = vmatpush.msra.mxu1 %v159_v4  ;;  %v158_v5 = vld [vmem:[#allocation8 + $0x70] sm:$0xff]  ;;  %v549_v6 = vmul.f32 %v312_v3, %v546_v2  ;;  %v157_v7 = vld [vmem:[#allocation8 + $0x68] sm:$0xff]  ;;  %v156_v8 = vld [vmem:[#allocation8 + $0x60] sm:$0xff] }
  0x19   :  { %138 = vmatpush.msra.mxu0 %v113_v1  ;;  %v155_v9 = vld [vmem:[#allocation8 + $0x58] sm:$0xff]  ;;  %v154_v10 = vld [vmem:[#allocation8 + $0x50] sm:$0xff]  ;;  %v153_v11 = vld [vmem:[#allocation8 + $0x48] sm:$0xff] }
  0x1a   :  { %165 = vmatpush.msra.mxu1 %v158_v5  ;;  %301 = vmatmul.msk.f32.vlgmr.msra.gmra.mxu0 %vm119_vm0, %v549_v6  ;;  %v152_v12 = vld [vmem:[#allocation8 + $0x40] sm:$0xff]  ;;  %v151_v13 = vld [vmem:[#allocation8 + $0x38] sm:$0xff]  ;;  %v150_v14 = vld [vmem:[#allocation8 + $0x30] sm:$0xff] }
  0x1b   :  { %v149_v15 = vld [vmem:[#allocation8 + $0x28] sm:$0xff]  ;;  %v148_v16 = vld [vmem:[#allocation8 + $0x20] sm:$0xff]  ;;  %v147_v17 = vld [vmem:[#allocation8 + $0x18] sm:$0xff] }
  0x1c   :  { %166 = vmatpush.msra.mxu1 %v157_v7  ;;  %v146_v18 = vld [vmem:[#allocation8 + $0x10] sm:$0xff]  ;;  %v145_v19 = vld [vmem:[#allocation8 + $0x8] sm:$0xff]  ;;  %v144_v20 = vld [vmem:[#allocation8] sm:$0xff] }
  0x1d   :  { %v215_v21 = vld [vmem:[#allocation10 + $0xf0] sm:$0xff]  ;;  %v216_v22 = vld [vmem:[#allocation10 + $0xf8] sm:$0xff]  ;;  %v213_v23 = vld [vmem:[#allocation10 + $0xe0] sm:$0xff] }
  0x1e   :  { %167 = vmatpush.msra.mxu1 %v156_v8  ;;  %223 = vmatpush.msra.mxu2 %v215_v21  ;;  %v214_v24 = vld [vmem:[#allocation10 + $0xe8] sm:$0xff]  ;;  %v211_v25 = vld [vmem:[#allocation10 + $0xd0] sm:$0xff]  ;;  %v212_v26 = vld [vmem:[#allocation10 + $0xd8] sm:$0xff] }
  0x1f   :  { %243 = vmatpush.msra.mxu3 %v216_v22  ;;  %v209_v27 = vld [vmem:[#allocation10 + $0xc0] sm:$0xff]  ;;  %v210_v28 = vld [vmem:[#allocation10 + $0xc8] sm:$0xff]  ;;  %v207_v29 = vld [vmem:[#allocation10 + $0xb0] sm:$0xff] }
  0x20   :  { %168 = vmatpush.msra.mxu1 %v155_v9  ;;  %224 = vmatpush.msra.mxu2 %v213_v23  ;;  %v208_v30 = vld [vmem:[#allocation10 + $0xb8] sm:$0xff]  ;;  %v205_v31 = vld [vmem:[#allocation10 + $0xa0] sm:$0xff]  ;;  %v206_v32 = vld [vmem:[#allocation10 + $0xa8] sm:$0xff] }
  0x21   :  { %244 = vmatpush.msra.mxu3 %v214_v24  ;;  %v203_v33 = vld [vmem:[#allocation10 + $0x90] sm:$0xff]  ;;  %v204_v34 = vld [vmem:[#allocation10 + $0x98] sm:$0xff]  ;;  %v201_v35 = vld [vmem:[#allocation10 + $0x80] sm:$0xff] }
  0x22   :  { %169 = vmatpush.msra.mxu1 %v154_v10  ;;  %225 = vmatpush.msra.mxu2 %v211_v25  ;;  %v202_v36 = vld [vmem:[#allocation10 + $0x88] sm:$0xff]  ;;  %v199_v37 = vld [vmem:[#allocation10 + $0x70] sm:$0xff]  ;;  %v200_v38 = vld [vmem:[#allocation10 + $0x78] sm:$0xff] }
  0x23   :  { %245 = vmatpush.msra.mxu3 %v212_v26  ;;  %v197_v39 = vld [vmem:[#allocation10 + $0x60] sm:$0xff]  ;;  %v198_v40 = vld [vmem:[#allocation10 + $0x68] sm:$0xff]  ;;  %v195_v41 = vld [vmem:[#allocation10 + $0x50] sm:$0xff] }
  0x24   :  { %170 = vmatpush.msra.mxu1 %v153_v11  ;;  %226 = vmatpush.msra.mxu2 %v209_v27  ;;  %v196_v42 = vld [vmem:[#allocation10 + $0x58] sm:$0xff]  ;;  %v193_v43 = vld [vmem:[#allocation10 + $0x40] sm:$0xff]  ;;  %v194_v44 = vld [vmem:[#allocation10 + $0x48] sm:$0xff] }
  0x25   :  { %246 = vmatpush.msra.mxu3 %v210_v28  ;;  %v191_v45 = vld [vmem:[#allocation10 + $0x30] sm:$0xff]  ;;  %v192_v46 = vld [vmem:[#allocation10 + $0x38] sm:$0xff]  ;;  %v313_v47 = vld [vmem:[%s574_s3] ss:$0 sm:$0xff] }
  0x26   :  { %171 = vmatpush.msra.mxu1 %v152_v12  ;;  %227 = vmatpush.msra.mxu2 %v207_v29  ;;  %v189_v51 = vld [vmem:[#allocation10 + $0x20] sm:$0xff]  ;;  %v190_v52 = vld [vmem:[#allocation10 + $0x28] sm:$0xff]  ;;  %v187_v53 = vld [vmem:[#allocation10 + $0x10] sm:$0xff] }
  0x27   :  { %247 = vmatpush.msra.mxu3 %v208_v30  ;;  %v188_v54 = vld [vmem:[#allocation10 + $0x18] sm:$0xff]  ;;  %v185_v55 = vld [vmem:[#allocation10] sm:$0xff]  ;;  %v186_v56 = vld [vmem:[#allocation10 + $0x8] sm:$0xff] }
  0x28   :  { %172 = vmatpush.msra.mxu1 %v151_v13  ;;  %228 = vmatpush.msra.mxu2 %v205_v31  ;;  %v314_v57 = vld [vmem:[%s576_s5] ss:$0 sm:$0xff]  ;;  %v107_v4 = vld [vmem:[#allocation5] sm:$0x1]  ;;  %s480_s5 = smov [#allocation11]  }
  0x29   :  { %248 = vmatpush.msra.mxu3 %v206_v32  ;;  %v217_v61 = vld [vmem:[%s578_s7] sm:$0x3]  ;;  %v108_v5 = vsub.f32 1.0, %v107_v4  ;;  %s283_s7 = sshll.u32 %s480_s5, 4  ;;  %s284_s7 = int_to_ptr.vmem [resolvable:$true] %s283_s7 }
  0x2a   :  { %173 = vmatpush.msra.mxu1 %v150_v14  ;;  %229 = vmatpush.msra.mxu2 %v203_v33  ;;  %v219_v62 = vperm.slane %v217_v61, 0  ;;  %v220_v7 = vperm.slane %v217_v61, 1 }
  0x2b   :  { %249 = vmatpush.msra.mxu3 %v204_v34  ;;  %v269_v12 = vperm.slane %v108_v5, 0 }
  0x2c   :  { %174 = vmatpush.msra.mxu1 %v149_v15  ;;  %230 = vmatpush.msra.mxu2 %v201_v35 }
  0x2d   :  { %250 = vmatpush.msra.mxu3 %v202_v36 }
  0x2e   :  { %175 = vmatpush.msra.mxu1 %v148_v16  ;;  %231 = vmatpush.msra.mxu2 %v199_v37 }
  0x2f   :  { %251 = vmatpush.msra.mxu3 %v200_v38 }
  0x30   :  { %176 = vmatpush.msra.mxu1 %v147_v17  ;;  %232 = vmatpush.msra.mxu2 %v197_v39 }
  0x31   :  { %252 = vmatpush.msra.mxu3 %v198_v40 }
  0x32   :  { %177 = vmatpush.msra.mxu1 %v146_v18  ;;  %233 = vmatpush.msra.mxu2 %v195_v41 }
  0x33   :  { %253 = vmatpush.msra.mxu3 %v196_v42 }
  0x34   :  { %178 = vmatpush.msra.mxu1 %v145_v19  ;;  %234 = vmatpush.msra.mxu2 %v193_v43 }
  0x35   :  { %254 = vmatpush.msra.mxu3 %v194_v44 }
  0x36   :  { %179 = vmatpush.msra.mxu1 %v144_v20  ;;  %235 = vmatpush.msra.mxu2 %v191_v45 }
  0x37   :  { %255 = vmatpush.msra.mxu3 %v192_v46 }
  0x38   :  { %236 = vmatpush.msra.mxu2 %v189_v51 }
  0x39   :  { %256 = vmatpush.msra.mxu3 %v190_v52 }
  0x3a   :  { %237 = vmatpush.msra.mxu2 %v187_v53 }
  0x3b   :  { %257 = vmatpush.msra.mxu3 %v188_v54 }
  0x3c   :  { %238 = vmatpush.msra.mxu2 %v185_v55 }
  0x3d   :  { %258 = vmatpush.msra.mxu3 %v186_v56 }
  0x97   :  { %v140_v48 = vpop.f32.mrf.mxu0 }
  0x98   :  { %v141_v49 = vadd.f32 %v313_v47, %v140_v48 }
  0x9a   :  { %v143_v50 = vmax.f32 %v141_v49, 0.0 }
  0x9c   :  { %180 = vmatmul.f32.vlgmr.msra.gmra.mxu1 %v143_v50 }
 0x119   :  { %v181_v58 = vpop.f32.mrf.mxu1 }
 0x11a   :  { %v182_v59 = vadd.f32 %v314_v57, %v181_v58 }
 0x11c   :  { %v184_v60 = vmax.f32 %v182_v59, 0.0 }
 0x11e   :  { %239 = vmatmul.f32.vlgmr.msra.gmra.mxu2 %v184_v60  ;;  %259 = vmatmul.f32.vlgmr.msra.gmra.mxu3 %v184_v60 }
 0x1a1   :  { %v240_v63 = vpop.f32.mrf.mxu2  ;;  %v260_v8 = vpop.f32.mrf.mxu3 }
 0x1a2   :  { %v241_v0 = vadd.f32 %v240_v63, %v219_v62  ;;  %v261_v10 = vadd.f32 %v260_v8, %v220_v7 }
 0x1a4   :  { %315 = vtanh.f32 %v241_v0 }
 0x1aa   :  { %v316_v1 = vpop.eup %315 }
 0x1ab   :  { %v264_v3 = vmul.f32 1.442695, %v316_v1  ;;  %274 = vadd.xlane.f32.xlu0 %v316_v1 }
 0x1ad   :  { %317 = vpow2.f32 %v264_v3 }
 0x1b3   :  { %v318_v9 = vpop.eup %317 }
 0x1b4   :  { %v266_v11 = vmul.f32 %v318_v9, %v546_v2 }
 0x1b6   :  { %v267_v13 = vadd.f32 %v266_v11, %v261_v10 }
 0x1b8   :  { %v271_v14 = vmul.f32 %v269_v12, %v267_v13 }
 0x1ba   :  { %v272_v15 = vadd.f32 %v271_v14, %v549_v6 }
 0x1bc   :  { %273 = vst.msk [vmem:[#allocation11] sm:$0xff] %vm119_vm0, %v272_v15 }
 0x1bd   :  { %288 = dma.vmem_to_hbm [thread:$0]  %s284_s7, 128, %s286_s19, [#allocation4]  }
 0x21e   :  { %v275_v16 = vpop.xlane.xlu0 %274 }
 0x21f   :  { %277 = vst.msk [vmem:[%s580_s9] sm:$0xff] %vm276_vm1, %v275_v16 }
 0x220   :  { %469 = dma.done.wait [#allocation4], 128  }
 0x221   :  { %470 = vsyncadd [#allocation4], 4294967168 }
 0x222   :  { %297 = vsyncpa [#allocation3], 1 }
 0x223   :  { %298 = vsyncpa [#allocation6], 1 }
 0x224   :  { %299 = vsyncpa [#allocation9], 1 }
 0x225   :  { %300 = vsyncpa [#allocation4], 1 }

</bundles_post_ra>
